<compile_context>
chip_gen: v6e
topology: v6e:2x2x1
jax: 0.10.0
libtpu: 0.0.40
codegen_flags: <defaults>
</compile_context>

<pallas_src>
import numpy as np
import jax
import jax.numpy as jnp
from jax import lax
from jax.experimental import pallas as pl
from jax.experimental.pallas import tpu as pltpu


# ---------------------------------------------------------------------------
# Pallas kernel: fused patch-embedding matmul + (bias+pos) add
# ---------------------------------------------------------------------------
def _fused_embed_kernel(x_ref, w_ref, pos_ref, o_ref):
    # x_ref  : (tm, K)  bf16 patch pixels (row 0 of the sequence is zero)
    # w_ref  : (K, D)   bf16 full conv weight (VMEM-resident, constant index)
    # pos_ref: (tm, D)  bf16 positional embedding with conv bias folded in
    # o_ref  : (tm, D)  output tile
    acc = jnp.dot(x_ref[...], w_ref[...], preferred_element_type=jnp.float32)
    o_ref[...] = (acc + pos_ref[...].astype(jnp.float32)).astype(o_ref.dtype)


def fused_embed_pallas(x_ext, w_mat, pos_ext, *, out_dtype,
                       tm_pref=512, vmem_budget=40 * 2**20):
    """out[b, s, :] = x_ext[b, s, :] @ w_mat + pos_ext[s, :]."""
    B, S, K = x_ext.shape
    Kw, D = w_mat.shape
    assert Kw == K and pos_ext.shape == (S, D)
    out_isz = jnp.dtype(out_dtype).itemsize

    # Full-D tiles.  Pick the largest 8-aligned tm whose double-buffered
    # working set stays under the VMEM budget (fits v7x's 64 MiB with
    # headroom; v5e/v6e have 128 MiB physical).
    def working_set(tm):
        return (2 * tm * (2 * K + 2 * D + out_isz * D)   # x + pos + out tiles
                + 2 * K * D * 2)                         # resident weight

    tm = S if S <= tm_pref else tm_pref                  # tm_pref multiple of 8
    while working_set(tm) > vmem_budget and tm > 8:
        tm = max(8, (tm // 2 + 7) // 8 * 8)

    grid = (pl.cdiv(S, tm), B)   # B innermost: pos / W block indices constant

    cost = pl.CostEstimate(
        flops=2 * B * S * K * D,
        transcendentals=0,
        bytes_accessed=(x_ext.size * x_ext.dtype.itemsize
                        + w_mat.size * w_mat.dtype.itemsize   # read once
                        + pos_ext.size * pos_ext.dtype.itemsize  # read once
                        + B * S * D * out_isz),
    )

    vmem_limit = int(min(max(working_set(tm) + (8 << 20), 32 << 20), 48 << 20))

    return pl.pallas_call(
        _fused_embed_kernel,
        out_shape=jax.ShapeDtypeStruct((B, S, D), out_dtype),
        grid_spec=pltpu.PrefetchScalarGridSpec(
            num_scalar_prefetch=0,
            grid=grid,
            in_specs=[
                # x tile: index changes every step -> each byte read once
                pl.BlockSpec((None, tm, K), lambda m, b: (b, m, 0)),
                # full conv weight, constant index -> single DMA, stays in VMEM
                pl.BlockSpec((K, D), lambda m, b: (0, 0)),
                # bias+pos tile: independent of b -> one DMA per M-tile
                pl.BlockSpec((tm, D), lambda m, b: (m, 0)),
            ],
            out_specs=pl.BlockSpec((None, tm, D), lambda m, b: (b, m, 0)),
        ),
        compiler_params=pltpu.CompilerParams(
            dimension_semantics=("parallel", "arbitrary"),
            vmem_limit_bytes=vmem_limit),
        cost_estimate=cost,
    )(x_ext, w_mat, pos_ext)


# ---------------------------------------------------------------------------
# Glue: PyTorch-compatible bicubic resize matrices (F.interpolate, a=-0.75,
# align_corners=False, antialias=False), built as dense 1D weights (separable).
# TODO(synk): verify numerics against torch.nn.functional.interpolate for the
#             H != grid case (torch-free tests here can only be self-consistent).
# ---------------------------------------------------------------------------
def _bicubic_matrix(out_size: int, in_size: int) -> np.ndarray:
    A = -0.75
    W = np.zeros((out_size, in_size), dtype=np.float64)
    scale = in_size / out_size
    for o in range(out_size):
        src = (o + 0.5) * scale - 0.5
        i0 = int(np.floor(src))
        t = src - i0
        d = np.array([t + 1.0, t, 1.0 - t, 2.0 - t])
        w = np.empty(4)
        w[1] = ((A + 2.0) * d[1] - (A + 3.0)) * d[1] * d[1] + 1.0
        w[2] = ((A + 2.0) * d[2] - (A + 3.0)) * d[2] * d[2] + 1.0
        w[0] = ((A * d[0] - 5.0 * A) * d[0] + 8.0 * A) * d[0] - 4.0 * A
        w[3] = ((A * d[3] - 5.0 * A) * d[3] + 8.0 * A) * d[3] - 4.0 * A
        for k in range(4):
            idx = min(max(i0 - 1 + k, 0), in_size - 1)  # border clamp
            W[o, idx] += w[k]
    return W.astype(np.float32)


# ---------------------------------------------------------------------------
# InternVisionEmbeddings (JAX/Pallas)
# ---------------------------------------------------------------------------
class InternVisionEmbeddingsPallas:
    def __init__(self, hidden_size, image_size, patch_size, key,
                 dtype=jnp.float32):
        self.embed_dim = hidden_size
        self.image_size = image_size
        self.patch_size = patch_size
        self.num_patches = (image_size // patch_size) ** 2
        self.num_positions = self.num_patches + 1
        self.dtype = dtype

        k1, k2, k3, k4 = jax.random.split(key, 4)
        D, P = hidden_size, patch_size
        K = 3 * P * P
        # deterministic synthetic parameters (same shapes as the nn.Module)
        self.class_embedding = (
            0.02 * jax.random.normal(k1, (1, 1, D))).astype(dtype)
        self.conv_weight = (
            0.02 * jax.random.normal(k2, (D, 3, P, P))).astype(dtype)
        self.conv_bias = (
            0.02 * jax.random.normal(k3, (D,))).astype(dtype)
        self.position_embedding = (
            0.02 * jax.random.normal(k4, (1, self.num_positions, D))).astype(dtype)
        # precomputed bf16 matmul weight [K, D] (MXU operand, (c, kh, kw) order)
        self.w_mat_bf16 = self.conv_weight.reshape(D, K).T.astype(jnp.bfloat16)

    def _get_pos_embed(self, H, W):
        g = self.image_size // self.patch_size
        D = self.embed_dim
        pos = self.position_embedding[0, 1:, :].astype(jnp.float32)
        pos = pos.reshape(g, g, D)
        if H == g and W == g:
            return pos.reshape(H * W, D)
        Wh = jnp.asarray(_bicubic_matrix(H, g))
        Ww = jnp.asarray(_bicubic_matrix(W, g))
        out = jnp.einsum('hi,wj,ijd->hwd', Wh, Ww, pos)
        return out.reshape(H * W, D)

    def __call__(self, pixel_values):
        # pixel_values: NCHW [B, 3, H_img, W_img]
        B, C, H_img, W_img = pixel_values.shape
        P, D = self.patch_size, self.embed_dim
        H, W = H_img // P, W_img // P
        HW = H * W
        K = C * P * P

        # bf16 patchify: non-overlapping patches flattened in (c, kh, kw)
        # order (matches Conv2d weight layout).
        x = pixel_values.astype(jnp.bfloat16)
        x_patches = (x.reshape(B, C, H, P, W, P)
                      .transpose(0, 2, 4, 1, 3, 5)
                      .reshape(B, HW, K))
        # Prepend one zero row per image: row 0 is the class-token slot, so the
        # kernel produces the full [B, HW+1, D] output (no concat afterwards).
        # TODO(synk): avoid materializing x_ext entirely by DMA-ing raw NCHW
        #             row-blocks into the kernel and flattening patches in VMEM.
        x_ext = jnp.pad(x_patches, ((0, 0), (1, 0), (0, 0)))

        # Positional embedding with conv bias folded into the patch rows;
        # row 0 carries class_embedding + its positional embedding.  Stored in
        # bf16 (upcast inside the kernel) to halve its HBM stream.
        pos_f32 = self.position_embedding.astype(jnp.float32)
        cls_row = self.class_embedding[0].astype(jnp.float32) + pos_f32[0, :1, :]
        bias = self.conv_bias.astype(jnp.float32)[None, :]
        pos_patch = self._get_pos_embed(H, W) + bias             # [HW, D]
        pos_ext = jnp.concatenate([cls_row, pos_patch], axis=0)  # [HW+1, D]
        pos_ext = pos_ext.astype(jnp.bfloat16)

        return fused_embed_pallas(x_ext, self.w_mat_bf16, pos_ext,
                                  out_dtype=self.dtype)


# ---------------------------------------------------------------------------
# Reference (plain JAX, f32) for a sanity check
# ---------------------------------------------------------------------------
def reference_forward(mod: InternVisionEmbeddingsPallas, pixel_values):
    B = pixel_values.shape[0]
    P, D = mod.patch_size, mod.embed_dim
    y = lax.conv_general_dilated(
        pixel_values.astype(jnp.float32),
        mod.conv_weight.astype(jnp.float32),
        window_strides=(P, P), padding='VALID',
        dimension_numbers=('NCHW', 'OIHW', 'NCHW'))
    y = y + mod.conv_bias.astype(jnp.float32).reshape(1, D, 1, 1)
    _, _, H, W = y.shape
    patch = y.reshape(B, D, H * W).transpose(0, 2, 1)
    cls = jnp.broadcast_to(mod.class_embedding.astype(jnp.float32), (B, 1, D))
    emb = jnp.concatenate([cls, patch], axis=1)
    pos = jnp.concatenate(
        [mod.position_embedding[:, :1, :].astype(jnp.float32),
         mod._get_pos_embed(H, W)[None]], axis=1)
    return (emb + pos).astype(mod.dtype)


if __name__ == "__main__":
    key = jax.random.PRNGKey(0)
    k1, k2, k3 = jax.random.split(key, 3)

    # --- test 1: tiny config, single full-array tile -----------------------
    mod = InternVisionEmbeddingsPallas(hidden_size=32, image_size=16,
                                       patch_size=4, key=k1)
    px = jax.random.normal(k2, (2, 3, 16, 16), dtype=jnp.float32)
    out = jax.block_until_ready(mod(px))
    ref = jax.block_until_ready(reference_forward(mod, px))
    assert out.shape == (2, 17, 32), out.shape
    np.testing.assert_allclose(np.asarray(out), np.asarray(ref),
                               rtol=2e-2, atol=2e-2)

    # --- test 2: larger S/D, exercises the (M, B) grid & resident weight ---
    mod2 = InternVisionEmbeddingsPallas(hidden_size=640, image_size=64,
                                        patch_size=4, key=k3)
    px2 = jax.random.normal(k2, (2, 3, 64, 64), dtype=jnp.float32)
    out2 = jax.block_until_ready(mod2(px2))
    ref2 = jax.block_until_ready(reference_forward(mod2, px2))
    assert out2.shape == (2, 257, 640), out2.shape
    np.testing.assert_allclose(np.asarray(out2), np.asarray(ref2),
                               rtol=2e-2, atol=2e-2)

    # --- test 3: dynamic-resolution input (bicubic pos-embed resize path) --
    px3 = jax.random.normal(k2, (2, 3, 32, 32), dtype=jnp.float32)
    out3 = jax.block_until_ready(mod2(px3))
    ref3 = jax.block_until_ready(reference_forward(mod2, px3))
    assert out3.shape == (2, 65, 640), out3.shape
    np.testing.assert_allclose(np.asarray(out3), np.asarray(ref3),
                               rtol=2e-2, atol=2e-2)

    print("KERNEL_OK")
</pallas_src>

<mosaic_0001>
module attributes {stable_mosaic.version = 11 : i64} {
  func.func @_fused_embed_kernel(%arg0: i32, %arg1: i32, %arg2: memref<1x17x48xbf16, #tpu.memory_space<vmem>>, %arg3: memref<48x32xbf16, #tpu.memory_space<vmem>>, %arg4: memref<17x32xbf16, #tpu.memory_space<vmem>>, %arg5: memref<1x17x32xf32, #tpu.memory_space<vmem>>) attributes {dimension_semantics = [#tpu.dimension_semantics<parallel>, #tpu.dimension_semantics<arbitrary>], iteration_bounds = array<i64: 1, 2>, scalar_prefetch = 0 : i64, scratch_operands = 0 : i64, tpu.core_type = #tpu.core_type<tc>, window_params = [{transform_indices = @transform_0, window_bounds = array<i64: 1, 17, 48>}, {pipeline_mode = #tpu.pipeline_mode<synchronous>, transform_indices = @transform_1, window_bounds = array<i64: 48, 32>}, {transform_indices = @transform_2, window_bounds = array<i64: 17, 32>}, {transform_indices = @transform_3, window_bounds = array<i64: 1, 17, 32>}]} {
    %c0 = arith.constant 0 : index
    %c0_0 = arith.constant 0 : index
    %c0_1 = arith.constant 0 : index
    %0 = vector.load %arg2[%c0, %c0_0, %c0_1] : memref<1x17x48xbf16, #tpu.memory_space<vmem>>, vector<1x17x48xbf16>
    %1 = vector.shape_cast %0 : vector<1x17x48xbf16> to vector<17x48xbf16>
    %c0_2 = arith.constant 0 : index
    %c0_3 = arith.constant 0 : index
    %2 = vector.load %arg3[%c0_2, %c0_3] : memref<48x32xbf16, #tpu.memory_space<vmem>>, vector<48x32xbf16>
    %cst = arith.constant dense<0.000000e+00> : vector<17x32xf32>
    %3 = tpu.matmul %1, %2, %cst {dimension_numbers = #tpu.dot_dimension_numbers<[1], [0], [0], [1], [0, 0, 1, 1], [], []>} : vector<17x48xbf16>, vector<48x32xbf16>, vector<17x32xf32> -> vector<17x32xf32>
    %c0_4 = arith.constant 0 : index
    %c0_5 = arith.constant 0 : index
    %4 = vector.load %arg4[%c0_4, %c0_5] : memref<17x32xbf16, #tpu.memory_space<vmem>>, vector<17x32xbf16>
    %5 = arith.extf %4 : vector<17x32xbf16> to vector<17x32xf32>
    %6 = arith.addf %3, %5 : vector<17x32xf32>
    %c0_6 = arith.constant 0 : index
    %c0_7 = arith.constant 0 : index
    %c0_8 = arith.constant 0 : index
    %7 = vector.load %arg5[%c0_6, %c0_7, %c0_8] : memref<1x17x32xf32, #tpu.memory_space<vmem>>, vector<1x17x32xf32>
    %8 = vector.shape_cast %7 : vector<1x17x32xf32> to vector<17x32xf32>
    %9 = vector.shape_cast %6 : vector<17x32xf32> to vector<1x17x32xf32>
    tpu.vector_store %arg5[%c0_6, %c0_7, %c0_8], %9 {strides = array<i32>} : memref<1x17x32xf32, #tpu.memory_space<vmem>>, vector<1x17x32xf32>,
    return
  }
  func.func @transform_0(%arg0: i32, %arg1: i32) -> (i32, i32, i32) {
    %c0_i32 = arith.constant 0 : i32
    %c0_i32_0 = arith.constant 0 : i32
    return %arg1, %arg0, %c0_i32 : i32, i32, i32
  }
  func.func @transform_1(%arg0: i32, %arg1: i32) -> (i32, i32) {
    %c0_i32 = arith.constant 0 : i32
    %c0_i32_0 = arith.constant 0 : i32
    %c0_i32_1 = arith.constant 0 : i32
    return %c0_i32, %c0_i32_0 : i32, i32
  }
  func.func @transform_2(%arg0: i32, %arg1: i32) -> (i32, i32) {
    %c0_i32 = arith.constant 0 : i32
    %c0_i32_0 = arith.constant 0 : i32
    return %arg0, %c0_i32 : i32, i32
  }
  func.func @transform_3(%arg0: i32, %arg1: i32) -> (i32, i32, i32) {
    %c0_i32 = arith.constant 0 : i32
    %c0_i32_0 = arith.constant 0 : i32
    return %arg1, %arg0, %c0_i32 : i32, i32, i32
  }
}

</mosaic_0001>

<bundles_post_ra>
// kernel: tpu_custom_call.1
= control target key start
LH: loop header
LB: loop body
LE: loop exit
PB: predicated region body
PF: predicated region fallthrough
CT: control target
= control target key end

     0   :  { %s547_s12 = smov 0   ;;  %s549_s13 = smov 0   ;;  %s595_s0 = inlined_call_operand.vmem [shape: bf16[2,17,48], index: 0, kind: input, shape index: {}]   ;;  %s596_s1 = inlined_call_operand.vmem [shape: bf16[48,32], index: 1, kind: input, shape index: {}]   ;;  %s597_s2 = inlined_call_operand.vmem [shape: bf16[17,32], index: 2, kind: input, shape index: {}]   ;;  %s598_s3 = inlined_call_operand.vmem [shape: f32[2,17,32], index: 3, kind: output, shape index: {}]  }
   0x1   :  { %s551_s14 = smov 0  }
   0x2 LB: > { %s22_s15 = sadd.s32 1, %s521_s13  ;;  %p441_p0 = scmp.ge.s32.totalorder %s525_s14, 1  ;;  %s525_s14 = sphi %s551_s14, %s13_s14   ;;  %s521_s13 = sphi %s549_s13, %s600_s13   ;;  %s517_s12 = sphi %s547_s12, %s599_s12  }
   0x3   : > { %p23_p1 = scmp.ge.s32.totalorder %s22_s15, 2  ;;  %p169_p2 = scmp.lt.s32.totalorder %s525_s14, 3 }
   0x5   : > { %s602_s15 = smov (%p23_p1, %s22_s15), 0  ;;  %p170_p3 = pnand %p441_p0, %p169_p2 }
   0x6   : > { %p207_p4 = scmp.lt.s32.totalorder (!%p170_p3), %s517_s12, 1 }
   0x7   : > { %173 = sbr.rel (%p170_p3) target bundleno = 227 (0xe3), region = 32 }
   0xc   : > { %v498_v0 = vld [vmem:[%s596_s1 + $0x10] sm:$0xff]   ;;  %v499_v1 = vld [vmem:[%s596_s1 + $0x8] sm:$0xff]   ;;  %s604_s12 = smov (!%p207_p4, %s517_s12), 1  ;;  %v500_v2 = vld [vmem:[%s596_s1] sm:$0xff]   ;;  %vm274_vm0 = vcmask 392192   ;;  %vm332_vm1 = vcmask 253952  }
   0xd   : > { %462 = vmatprep.subr.bf16.mxu0 %v498_v0  ;;  %s472_s22 = smul.u32 12, %s604_s12  ;;  %v244_v5 = vld [vmem:[%s597_s2 + $0x8] sm:$0x1]  ;;  %v454_v6 = vld [vmem:[%s597_s2] sm:$0xff]   ;;  %vm329_vm2 = vcmask 261120  }
   0xe   : > { %463 = vmatpush3.bf16.msra.mxu0 %v498_v0  ;;  %s473_s28 = smul.u32 24, %s604_s12  ;;  %v247_v7 = vunpack.c.l.bf16 %v244_v5  ;;  %v455_v8 = vunpack.c.l.bf16 %v454_v6  ;;  %v456_v13 = vunpack.c.h.bf16 %v454_v6 }
   0xf   : > { %464 = vmatprep.subr.bf16.mxu0 %v499_v1  ;;  %s214_s25 = scalar_lea.vmem %s595_s0, %s472_s22 }
  0x10   : > { %v501_v3 = vld [vmem:[%s214_s25] sm:$0xff]   ;;  %v502_v4 = vld [vmem:[%s214_s25 + $0x8] ss:$0 sps:$4 sm:$0x11]   ;;  %s230_s6 = scalar_lea.vmem %s598_s3, %s473_s28 }
  0x11   : > { %468 = vmatprep.mubr.msk.bf16.mxu0 %vm274_vm0, %v501_v3 }
  0x12   : > { %465 = vmatpush3.bf16.msra.mxu0 %v499_v1 }
  0x13   : > { %466 = vmatprep.subr.bf16.mxu0 %v500_v2 }
  0x16   : > { %467 = vmatpush3.bf16.msra.mxu0 %v500_v2 }
  0x19   : > { %469 = vmatmul.mubr.msk.bf16.vlgmr.msra.gmra.mxu0 %vm274_vm0, %v502_v4 }
  0xd9   : > { %v470_v9 = vpop.f32.mrf.mxu0 }
  0xda   : > { %v324_v10 = vadd.f32 %v470_v9, %v247_v7 }
  0xdb   : > { %v315_v11 = vpop.f32.mrf.mxu0 }
  0xdc   : > { %333 = vst.msk [vmem:[%s230_s6 + $0x10] sm:$0x1] %vm332_vm1, %v324_v10  ;;  %v316_v12 = vadd.f32 %v455_v8, %v315_v11 }
  0xdd   : > { %v471_v14 = vpop.f32.mrf.mxu0 }
  0xde   : > { %330 = vst.msk [vmem:[%s230_s6] sm:$0xff] %vm329_vm2, %v316_v12 }
  0xdf   : > { %v318_v15 = vpop.f32.mrf.mxu0 }
  0xe0   : > { %v319_v16 = vadd.f32 %v456_v13, %v318_v15 }
  0xe2   : > { %331 = vst.msk [vmem:[%s230_s6 + $0x8] sm:$0xff] %vm329_vm2, %v319_v16 }
  0xe3 PF: > { %s13_s14 = sadd.s32 1, %s525_s14   ;;  %s599_s12 = smov %s521_s13 }
  0xe4   : > { %p10_p5 = scmp.ge.s32.totalorder %s13_s14, 4   ;;  %s600_s13 = smov %s602_s15 }
  0xe6   :  { %12 = sbr.rel (!%p10_p5) target bundleno = 2 (0x2), region = 65 }

</bundles_post_ra>
